<compile_context>
chip_gen: v5e
topology: v5e:2x2
jax: 0.10.0
libtpu: 0.0.40
codegen_flags: <defaults>
</compile_context>

<pallas_src>
import jax
import jax.numpy as jnp
from jax import lax
from jax.experimental import pallas as pl
from jax.experimental.pallas import tpu as pltpu


def conv_bn_kernel(x_ref, w_ref, bias_ref, o_ref):
    # x_ref:    (1, K, tn)  f32 im2col columns for one (batch, spatial-tile).
    # w_ref:    (E_pad, K)  f32 BN-scaled conv weights (resident across the grid).
    # bias_ref: (E_pad, 1)  f32 folded conv-bias + BN shift (resident).
    # o_ref:    (1, E_pad, tn) — NCHW-ordered output tile, lane-dense along tn.
    acc = jnp.dot(w_ref[...], x_ref[0], preferred_element_type=jnp.float32)
    o_ref[0] = (acc + bias_ref[...]).astype(o_ref.dtype)


def _round_up(x, m):
    return ((x + m - 1) // m) * m


def _cdiv(a, b):
    return (a + b - 1) // b


def _pick_spatial_tiling(hw, tn_target, min_tiles):
    """Balanced spatial tiles: n_tiles >= min_tiles, tile width a multiple of 128 lanes,
    minimising total padded columns (instead of padding hw up to a full extra tile)."""
    n_lo = max(min_tiles, _cdiv(hw, tn_target))
    best = None
    for n in range(n_lo, n_lo + 8):
        tn = _round_up(_cdiv(hw, n), 128)
        hw_pad = n * tn
        if best is None or hw_pad < best[2]:
            best = (n, tn, hw_pad)
        if hw_pad == _round_up(hw, 128):   # minimal possible lane padding reached
            break
    return best  # (n_tiles, tn, hw_pad)


def embedding_forward(x, weight, conv_bias, gamma, beta, running_mean, running_var,
                      *, stride=2, padding=1, eps=1e-5, tn=1024, out_dtype=jnp.float32):
    """x: (B, C, H, W) float32. weight: (E, C, kh, kw). Returns (B, E, Ho, Wo) in out_dtype."""
    B, C, H, W = x.shape
    E, _, kh, kw = weight.shape
    Ho = (H + 2 * padding - kh) // stride + 1
    Wo = (W + 2 * padding - kw) // stride + 1
    HW = Ho * Wo
    K = C * kh * kw

    # ---- im2col in transposed (B, K, HW) layout: the spatial axis stays on lanes ----
    xp = jnp.pad(x, ((0, 0), (0, 0), (padding, padding), (padding, padding)))
    patches = [xp[:, :, di:di + stride * Ho:stride, dj:dj + stride * Wo:stride]
               for di in range(kh) for dj in range(kw)]
    # (B, C, kh*kw, Ho, Wo) -> (B, C*kh*kw, Ho*Wo); K order (C-major, then kh, kw) matches
    # weight.reshape(E, K), spatial flatten matches NCHW.
    cols_t = jnp.stack(patches, axis=2).reshape(B, K, HW)

    # ---- fold conv bias + eval BatchNorm: scale into the weights, shift into a bias column ----
    scale = gamma / jnp.sqrt(running_var + eps)                    # (E,)
    bias = (conv_bias - running_mean) * scale + beta               # (E,)
    w_mat = weight.reshape(E, K) * scale[:, None]                  # (E, K), stays f32

    # ---- tiling: E on sublanes (round to 8), spatial on lanes (balanced multiples of 128) ----
    E_pad = _round_up(E, 8)
    min_tiles = 2 if (B == 1 and HW > 128) else 1    # keep both v7x TensorCores busy
    n_tiles, tn_eff, HW_pad = _pick_spatial_tiling(HW, tn, min_tiles)
    if E_pad != E:
        w_mat = jnp.pad(w_mat, ((0, E_pad - E), (0, 0)))
        bias = jnp.pad(bias, (0, E_pad - E))
    if HW_pad != HW:
        cols_t = jnp.pad(cols_t, ((0, 0), (0, 0), (0, HW_pad - HW)))
    bias_col = bias.reshape(E_pad, 1)

    out_full = pl.pallas_call(
        conv_bn_kernel,
        out_shape=jax.ShapeDtypeStruct((B, E_pad, HW_pad), out_dtype),
        grid_spec=pltpu.PrefetchScalarGridSpec(
            num_scalar_prefetch=0,
            grid=(B, n_tiles),
            in_specs=[
                pl.BlockSpec((1, K, tn_eff), lambda b, j: (b, 0, j)),
                pl.BlockSpec((E_pad, K), lambda b, j: (0, 0)),     # resident across grid steps
                pl.BlockSpec((E_pad, 1), lambda b, j: (0, 0)),     # resident across grid steps
            ],
            out_specs=pl.BlockSpec((1, E_pad, tn_eff), lambda b, j: (b, 0, j)),
        ),
        compiler_params=pltpu.CompilerParams(
            dimension_semantics=("parallel", "parallel")),
    )(cols_t, w_mat, bias_col)

    if E_pad != E or HW_pad != HW:
        out_full = out_full[:, :E, :HW]
    return out_full.reshape(B, E, Ho, Wo)    # free when no padding was needed


def _reference(x, weight, conv_bias, gamma, beta, running_mean, running_var,
               *, stride, padding, eps=1e-5):
    E = weight.shape[0]
    conv = lax.conv_general_dilated(
        x, weight, window_strides=(stride, stride),
        padding=((padding, padding), (padding, padding)),
        dimension_numbers=("NCHW", "OIHW", "NCHW"),
    ) + conv_bias.reshape(1, E, 1, 1)
    return (conv - running_mean.reshape(1, E, 1, 1)) / jnp.sqrt(
        running_var.reshape(1, E, 1, 1) + eps
    ) * gamma.reshape(1, E, 1, 1) + beta.reshape(1, E, 1, 1)


def _run_case(key, B, C, H, W, E, kh=3, kw=3, stride=2, padding=1):
    ks = jax.random.split(key, 7)
    x = jax.random.normal(ks[0], (B, C, H, W), dtype=jnp.float32)
    weight = jax.random.normal(ks[1], (E, C, kh, kw), dtype=jnp.float32) * 0.1
    conv_bias = jax.random.normal(ks[2], (E,), dtype=jnp.float32) * 0.1
    gamma = 1.0 + 0.1 * jax.random.normal(ks[3], (E,), dtype=jnp.float32)
    beta = 0.1 * jax.random.normal(ks[4], (E,), dtype=jnp.float32)
    running_mean = 0.1 * jax.random.normal(ks[5], (E,), dtype=jnp.float32)
    running_var = jnp.abs(1.0 + 0.1 * jax.random.normal(ks[6], (E,), dtype=jnp.float32))

    out = embedding_forward(x, weight, conv_bias, gamma, beta, running_mean, running_var,
                            stride=stride, padding=padding)
    out = jax.block_until_ready(out)

    Ho = (H + 2 * padding - kh) // stride + 1
    Wo = (W + 2 * padding - kw) // stride + 1
    assert out.shape == (B, E, Ho, Wo), out.shape

    ref = _reference(x, weight, conv_bias, gamma, beta, running_mean, running_var,
                     stride=stride, padding=padding)
    # All-f32 pipeline (f32 MXU accumulate): much tighter tolerance than the old bf16 version.
    assert jnp.allclose(out, ref, atol=1e-2, rtol=1e-2), \
        float(jnp.max(jnp.abs(out - ref)))


if __name__ == "__main__":
    key = jax.random.PRNGKey(0)
    k1, k2 = jax.random.split(key)
    # Case 1: E multiple of 8, HW=64 (exercises lane padding of the spatial axis).
    _run_case(k1, B=2, C=3, H=16, W=16, E=128)
    # Case 2: small odd spatial (HW=49) and small E=32 (no E padding, HW padding path).
    _run_case(k2, B=2, C=3, H=14, W=14, E=32)
    print("KERNEL_OK")
</pallas_src>

<mosaic_0001>
module attributes {stable_mosaic.version = 11 : i64} {
  func.func @conv_bn_kernel(%arg0: i32, %arg1: i32, %arg2: memref<1x27x128xf32, #tpu.memory_space<vmem>>, %arg3: memref<128x27xf32, #tpu.memory_space<vmem>>, %arg4: memref<128x1xf32, #tpu.memory_space<vmem>>, %arg5: memref<1x128x128xf32, #tpu.memory_space<vmem>>) attributes {dimension_semantics = [#tpu.dimension_semantics<parallel>, #tpu.dimension_semantics<parallel>], iteration_bounds = array<i64: 2, 1>, scalar_prefetch = 0 : i64, scratch_operands = 0 : i64, tpu.core_type = #tpu.core_type<tc>, window_params = [{transform_indices = @transform_0, window_bounds = array<i64: 1, 27, 128>}, {pipeline_mode = #tpu.pipeline_mode<synchronous>, transform_indices = @transform_1, window_bounds = array<i64: 128, 27>}, {pipeline_mode = #tpu.pipeline_mode<synchronous>, transform_indices = @transform_2, window_bounds = array<i64: 128, 1>}, {transform_indices = @transform_3, window_bounds = array<i64: 1, 128, 128>}]} {
    %c0 = arith.constant 0 : index
    %c0_0 = arith.constant 0 : index
    %0 = vector.load %arg3[%c0, %c0_0] : memref<128x27xf32, #tpu.memory_space<vmem>>, vector<128x27xf32>
    %c0_1 = arith.constant 0 : index
    %c0_2 = arith.constant 0 : index
    %c0_3 = arith.constant 0 : index
    %1 = vector.load %arg2[%c0_1, %c0_2, %c0_3] : memref<1x27x128xf32, #tpu.memory_space<vmem>>, vector<1x27x128xf32>
    %2 = vector.shape_cast %1 : vector<1x27x128xf32> to vector<27x128xf32>
    %cst = arith.constant dense<0.000000e+00> : vector<128x128xf32>
    %3 = tpu.matmul %0, %2, %cst {dimension_numbers = #tpu.dot_dimension_numbers<[1], [0], [0], [1], [0, 0, 1, 1], [], []>} : vector<128x27xf32>, vector<27x128xf32>, vector<128x128xf32> -> vector<128x128xf32>
    %c0_4 = arith.constant 0 : index
    %c0_5 = arith.constant 0 : index
    %4 = vector.load %arg4[%c0_4, %c0_5] : memref<128x1xf32, #tpu.memory_space<vmem>>, vector<128x1xf32>
    %5 = vector.broadcast %4 : vector<128x1xf32> to vector<128x128xf32>
    %6 = arith.addf %3, %5 : vector<128x128xf32>
    %c0_6 = arith.constant 0 : index
    %c0_7 = arith.constant 0 : index
    %c0_8 = arith.constant 0 : index
    %7 = vector.load %arg5[%c0_6, %c0_7, %c0_8] : memref<1x128x128xf32, #tpu.memory_space<vmem>>, vector<1x128x128xf32>
    %8 = vector.shape_cast %7 : vector<1x128x128xf32> to vector<128x128xf32>
    %9 = vector.shape_cast %6 : vector<128x128xf32> to vector<1x128x128xf32>
    tpu.vector_store %arg5[%c0_6, %c0_7, %c0_8], %9 {strides = array<i32>} : memref<1x128x128xf32, #tpu.memory_space<vmem>>, vector<1x128x128xf32>,
    return
  }
  func.func @transform_0(%arg0: i32, %arg1: i32) -> (i32, i32, i32) {
    %c0_i32 = arith.constant 0 : i32
    %c0_i32_0 = arith.constant 0 : i32
    return %arg0, %c0_i32, %arg1 : i32, i32, i32
  }
  func.func @transform_1(%arg0: i32, %arg1: i32) -> (i32, i32) {
    %c0_i32 = arith.constant 0 : i32
    %c0_i32_0 = arith.constant 0 : i32
    %c0_i32_1 = arith.constant 0 : i32
    return %c0_i32, %c0_i32_0 : i32, i32
  }
  func.func @transform_2(%arg0: i32, %arg1: i32) -> (i32, i32) {
    %c0_i32 = arith.constant 0 : i32
    %c0_i32_0 = arith.constant 0 : i32
    %c0_i32_1 = arith.constant 0 : i32
    return %c0_i32, %c0_i32_0 : i32, i32
  }
  func.func @transform_3(%arg0: i32, %arg1: i32) -> (i32, i32, i32) {
    %c0_i32 = arith.constant 0 : i32
    %c0_i32_0 = arith.constant 0 : i32
    return %arg0, %c0_i32, %arg1 : i32, i32, i32
  }
}

</mosaic_0001>

<bundles_post_ra>
// kernel: tpu_custom_call.1
= control target key start
LH: loop header
LB: loop body
LE: loop exit
PB: predicated region body
PF: predicated region fallthrough
CT: control target
= control target key end

     0   :  { %8 = vsyncpa [#allocation3], 0  ;;  %s979_s0 = inlined_call_operand.vmem [shape: f32[2,27,128], index: 0, kind: input, shape index: {}]   ;;  %s980_s1 = inlined_call_operand.vmem [shape: f32[128,27], index: 1, kind: input, shape index: {}]   ;;  %s981_s2 = inlined_call_operand.vmem [shape: f32[128,1], index: 2, kind: input, shape index: {}]   ;;  %s982_s3 = inlined_call_operand.hbm [shape: f32[2,128,128], index: 3, kind: output, shape index: {}]  }
   0x1   :  { %10 = vsyncpa [#allocation3 + $0x1], 0  ;;  %s747_s12 = smov 0   ;;  %s749_s13 = smov 0  }
   0x2   :  { %s751_s14 = smov 0   ;;  %s753_s15 = smov 0  }
   0x3   :  { %s755_s16 = smov 0   ;;  %s757_s17 = smov 0  }
   0x4 LB: > { %s539_s18 = sadd.s32 4294967295, %s722_s17   ;;  %s540_s19 = sadd.s32 4294967294, %s722_s17   ;;  %s722_s17 = sphi %s757_s17, %s16_s17   ;;  %s718_s16 = sphi %s755_s16, %s989_s16   ;;  %s714_s15 = sphi %s753_s15, %s988_s15   ;;  %s710_s14 = sphi %s751_s14, %s987_s14   ;;  %s706_s13 = sphi %s749_s13, %s986_s13   ;;  %s702_s12 = sphi %s747_s12, %s985_s12  }
   0x5   : > { %s28_s20 = sadd.s32 1, %s718_s16  ;;  %s107_s21 = sadd.s32 1, %s710_s14 }
   0x6   : > { %p30_p0 = scmp.ge.s32.totalorder %s28_s20, 2  ;;  %p117_p1 = scmp.ne.s32.totalorder %s710_s14, %s706_s13 }
   0x7   : > { %p118_p2 = scmp.eq.s32.totalorder %s539_s18, 1  ;;  %p123_p3 = scmp.ne.s32.totalorder %s706_s13, %s702_s12 }
   0x8   : > { %s991_s20 = smov (%p30_p0, %s28_s20), 0  ;;  %p124_p5 = scmp.eq.s32.totalorder %s540_s19, 1 }
   0x9   : > { %p787_p4 = por %p118_p2, %p117_p1  ;;  %s102_s23 = ssub.s32 %s718_s16, %s991_s20 }
   0xa   : > { %p543_p6 = scmp.ge.s32.totalorder %s722_s17, 1  ;;  %p105_p7 = scmp.eq.s32.totalorder %s102_s23, 0 }
   0xb   : > { %p794_p8 = por %p124_p5, %p123_p3  ;;  %p159_p9 = scmp.lt.s32.totalorder %s722_s17, 3 }
   0xc   : > { %s800_s25 = scalar_select %p105_p7, %s710_s14, %s107_s21  }
   0xd   : > { %p160_p10 = pnand %p543_p6, %p159_p9 }
   0xe   : > { %p186_p11 = scmp.lt.s32.totalorder (!%p160_p10), %s714_s15, 1  ;;  %s183_s27 = sand.u32 (!%p160_p10), 1, %s706_s13  }
   0xf   : > { %163 = sbr.rel (%p160_p10) target bundleno = 198 (0xc6), region = 32  ;;  %s544_s28 = sshll.u32 (!%p160_p10), %s183_s27, 7 }
  0x10   : > { %s922_s29 = scalar_lea.vmem (!%p160_p10), [#allocation2], %s544_s28  ;;  %s445_s8 = scalar_lea.sflag (!%p160_p10), [#allocation3], %s183_s27 }
  0x11   : > { %s458_s7 = sshll.u32 (!%p160_p10), %s922_s29, 4  ;;  %s664_s19 = scalar_lea.hbm (!%p160_p10), %s982_s3, 256  ;;  %s459_s7 = int_to_ptr.vmem [resolvable:$true] %s458_s7 }
  0x14   : > { %v216_v0 = vld [vmem:[%s981_s2 + $0x10] sm:$0xff]  ;;  %v214_v1 = vld [vmem:[%s981_s2] sm:$0xff]  ;;  %v724_v2 = vmov 0   ;;  %s187_s30 = scalar_select %p186_p11, %s714_s15, 1  ;;  %vm359_vm0 = vcmask 1042432   ;;  %v217_v6 = vld [vmem:[%s981_s2 + $0x18] sm:$0xff] }
  0x15   : > { %642 = vset.pattern.permute.xlu1 %v724_v2  ;;  %641 = vset.pattern.permute.xlu0 %v724_v2  ;;  %v218_v3 = vld [vmem:[%s981_s2 + $0x20] sm:$0xff]  ;;  %v215_v7 = vld [vmem:[%s981_s2 + $0x8] sm:$0xff]  ;;  %vm310_vm1 = vcmask 220160   ;;  %v221_v15 = vld [vmem:[%s981_s2 + $0x38] sm:$0xff] }
  0x16   : > { %242 = vperm.xlu1 %642, %v216_v0   ;;  %232 = vperm.xlu0 %641, %v214_v1   ;;  %s569_s6 = sshll.u32 %s187_s30, 5  ;;  %v194_v10 = vld [vmem:[%s980_s1] sm:$0xff]  ;;  %v219_v14 = vld [vmem:[%s981_s2 + $0x28] sm:$0xff]  ;;  %v220_v16 = vld [vmem:[%s981_s2 + $0x30] sm:$0xff]  ;;  %s570_s30 = sshll.u32 %s714_s15, 7 }
  0x17   : > { %643 = vset.pattern.permute.xlu2 %v724_v2  ;;  %s193_s9 = scalar_lea.vmem %s979_s0, %s569_s6  ;;  %v198_v11 = vld [vmem:[%s980_s1 + $0x20] sm:$0xff]  ;;  %v195_v17 = vld [vmem:[%s980_s1 + $0x8] sm:$0xff]  ;;  %v224_v22 = vld [vmem:[%s981_s2 + $0x50] sm:$0xff]  ;;  %s457_s6 = scalar_lea.hbm %s982_s3, %s570_s30 }
  0x18   : > { %252 = vperm.xlu2 %643, %v218_v3   ;;  %v213_v4 = vld [vmem:[%s193_s9 + $0x18] sm:$0x7]  ;;  %v212_v5 = vld [vmem:[%s193_s9 + $0x10] sm:$0xff]  ;;  %v211_v8 = vld [vmem:[%s193_s9 + $0x8] sm:$0xff]  ;;  %s460_s15 = sshll.u32 %s457_s6, 4  ;;  %s461_s15 = int_to_ptr.hbm [resolvable:$true] %s460_s15 }
  0x19   : > { %547 = vmatpush.msk.msra.mxu0 %vm359_vm0, %v213_v4  ;;  %571 = vmatpush.msk.msra.mxu1 %vm359_vm0, %v213_v4  ;;  %v210_v9 = vld [vmem:[%s193_s9] sm:$0xff]  ;;  %v199_v18 = vld [vmem:[%s980_s1 + $0x28] sm:$0xff]  ;;  %v196_v24 = vld [vmem:[%s980_s1 + $0x10] sm:$0xff]  ;;  %s658_s9 = sshra.s32 %s461_s15, 4  ;;  %s659_s9 = int_to_ptr.hbm [resolvable:$true] %s658_s9 }
  0x1a   : > { %572 = vmatpush.msk.msra.mxu2 %vm359_vm0, %v213_v4  ;;  %573 = vmatpush.msk.msra.mxu3 %vm359_vm0, %v213_v4  ;;  %v202_v12 = vld [vmem:[%s980_s1 + $0x40] sm:$0xff]  ;;  %v203_v19 = vld [vmem:[%s980_s1 + $0x48] sm:$0xff]  ;;  %v200_v25 = vld [vmem:[%s980_s1 + $0x30] sm:$0xff]  ;;  %s660_s10 = scalar_lea.hbm %s659_s9, 128  ;;  %p665_p1 = scmp.lt.s32.totalorder %s659_s9, %s982_s3 }
  0x1b   : > { %376 = vmatpush.msra.mxu0 %v212_v5  ;;  %574 = vmatpush.msra.mxu1 %v212_v5  ;;  %v206_v13 = vld [vmem:[%s980_s1 + $0x60] sm:$0xff]  ;;  %v207_v20 = vld [vmem:[%s980_s1 + $0x68] sm:$0xff]  ;;  %v204_v26 = vld [vmem:[%s980_s1 + $0x50] sm:$0xff]  ;;  %p661_p12 = scmp.ne.s32.totalorder %s659_s9, %s660_s10  ;;  %p666_p2 = scmp.lt.s32.totalorder %s664_s19, %s660_s10 }
  0x1c   : > { %575 = vmatpush.msra.mxu2 %v212_v5  ;;  %576 = vmatpush.msra.mxu3 %v212_v5  ;;  %v222_v21 = vld [vmem:[%s981_s2 + $0x40] sm:$0xff]  ;;  %v223_v23 = vld [vmem:[%s981_s2 + $0x48] sm:$0xff]  ;;  %v208_v27 = vld [vmem:[%s980_s1 + $0x70] sm:$0xff] }
  0x1d   : > { %377 = vmatpush.msra.mxu0 %v211_v8  ;;  %577 = vmatpush.msra.mxu1 %v211_v8  ;;  %v225_v28 = vld [vmem:[%s981_s2 + $0x58] sm:$0xff]  ;;  %v227_v29 = vld [vmem:[%s981_s2 + $0x68] sm:$0xff]  ;;  %v226_v30 = vld [vmem:[%s981_s2 + $0x60] sm:$0xff]  ;;  %p662_p13 = pnand %p661_p12, %p787_p4  ;;  %p667_p3 = por %p666_p2, %p665_p1 }
  0x1e   : > { %247 = vperm.xlu1 %642, %v217_v6   ;;  %237 = vperm.xlu0 %641, %v215_v7   ;;  %v197_v31 = vld [vmem:[%s980_s1 + $0x18] sm:$0xff]  ;;  %v228_v35 = vld [vmem:[%s981_s2 + $0x70] sm:$0xff] }
  0x1f   : > { %578 = vmatpush.msra.mxu2 %v211_v8  ;;  %579 = vmatpush.msra.mxu3 %v211_v8  ;;  %v201_v32 = vld [vmem:[%s980_s1 + $0x38] sm:$0xff]  ;;  %p663_p0 = pneg %p662_p13 }
  0x20   : > { %378 = vmatpush.msra.mxu0 %v210_v9  ;;  %580 = vmatpush.msra.mxu1 %v210_v9  ;;  %v205_v33 = vld [vmem:[%s980_s1 + $0x58] sm:$0xff] }
  0x21   : > { %581 = vmatpush.msra.mxu2 %v210_v9  ;;  %582 = vmatpush.msra.mxu3 %v210_v9  ;;  %v209_v34 = vld [vmem:[%s980_s1 + $0x78] sm:$0xff]  ;;  %p668_p5 = pnand %p667_p3, %p663_p0 }
  0x22   : > { %548 = vmatmul.msk.f32.vlgmr.msra.gmra.mxu0 %vm310_vm1, %v194_v10  ;;  %552 = vmatmul.msk.f32.vlgmr.msra.gmra.mxu1 %vm310_vm1, %v198_v11  ;;  %v229_v36 = vld [vmem:[%s981_s2 + $0x78] sm:$0xff] }
  0x23   : > { %556 = vmatmul.msk.f32.vlgmr.msra.gmra.mxu2 %vm310_vm1, %v202_v12  ;;  %560 = vmatmul.msk.f32.vlgmr.msra.gmra.mxu3 %vm310_vm1, %v206_v13 }
  0x24   : > { %257 = vperm.xlu2 %643, %v219_v14  }
  0x26   : > { %267 = vperm.xlu1 %642, %v221_v15   ;;  %262 = vperm.xlu0 %641, %v220_v16  }
  0x2a   : > { %549 = vmatmul.msk.f32.gmra.mxu0 %vm310_vm1, %v195_v17  ;;  %553 = vmatmul.msk.f32.gmra.mxu1 %vm310_vm1, %v199_v18 }
  0x2b   : > { %557 = vmatmul.msk.f32.gmra.mxu2 %vm310_vm1, %v203_v19  ;;  %561 = vmatmul.msk.f32.gmra.mxu3 %vm310_vm1, %v207_v20 }
  0x2c   : > { %272 = vperm.xlu2 %643, %v222_v21  }
  0x2e   : > { %282 = vperm.xlu1 %642, %v224_v22   ;;  %277 = vperm.xlu0 %641, %v223_v23  }
  0x32   : > { %550 = vmatmul.msk.f32.gmra.mxu0 %vm310_vm1, %v196_v24  ;;  %554 = vmatmul.msk.f32.gmra.mxu1 %vm310_vm1, %v200_v25 }
  0x33   : > { %558 = vmatmul.msk.f32.gmra.mxu2 %vm310_vm1, %v204_v26  ;;  %562 = vmatmul.msk.f32.gmra.mxu3 %vm310_vm1, %v208_v27 }
  0x34   : > { %287 = vperm.xlu2 %643, %v225_v28  }
  0x36   : > { %297 = vperm.xlu1 %642, %v227_v29   ;;  %292 = vperm.xlu0 %641, %v226_v30  }
  0x3a   : > { %551 = vmatmul.msk.f32.gmra.mxu0 %vm310_vm1, %v197_v31  ;;  %555 = vmatmul.msk.f32.gmra.mxu1 %vm310_vm1, %v201_v32 }
  0x3b   : > { %559 = vmatmul.msk.f32.gmra.mxu2 %vm310_vm1, %v205_v33  ;;  %563 = vmatmul.msk.f32.gmra.mxu3 %vm310_vm1, %v209_v34 }
  0x3c   : > { %302 = vperm.xlu2 %643, %v228_v35  }
  0x3e   : > { %307 = vperm.xlu0 %641, %v229_v36  }
  0x72   : > { %v253_v39 = vpop.permute.xlu2 %252 }
  0x7e   : > { %v258_v42 = vpop.permute.xlu2 %257 }
  0x86   : > { %v273_v50 = vpop.permute.xlu2 %272 }
  0x88   : > { %v243_v37 = vpop.permute.xlu1 %242  ;;  %v233_v38 = vpop.permute.xlu0 %232 }
  0x8e   : > { %v288_v61 = vpop.permute.xlu2 %287 }
  0x90   : > { %v248_v40 = vpop.permute.xlu1 %247  ;;  %v238_v41 = vpop.permute.xlu0 %237 }
  0x96   : > { %v303_v7 = vpop.permute.xlu2 %302 }
  0x98   : > { %v263_v43 = vpop.permute.xlu0 %262  ;;  %v268_v44 = vpop.permute.xlu1 %267 }
  0x9f   : > { %v380_v45 = vpop.f32.mrf.mxu0  ;;  %v392_v46 = vpop.f32.mrf.mxu1 }
  0xa0   : > { %v381_v47 = vadd.f32 %v380_v45, %v233_v38  ;;  %v393_v48 = vadd.f32 %v392_v46, %v253_v39  ;;  %v278_v49 = vpop.permute.xlu0 %277  ;;  %v283_v51 = vpop.permute.xlu1 %282 }
  0xa2   : > { %428 = vst [vmem:[%s922_s29] sm:$0xff] %v381_v47 }
  0xa3   : > { %432 = vst [vmem:[%s922_s29 + $0x20] sm:$0xff] %v393_v48 }
  0xa6   : > { %v404_v52 = vpop.f32.mrf.mxu2  ;;  %v416_v53 = vpop.f32.mrf.mxu3 }
  0xa7   : > { %v405_v54 = vadd.f32 %v404_v52, %v273_v50  ;;  %v383_v55 = vpop.f32.mrf.mxu0  ;;  %v395_v56 = vpop.f32.mrf.mxu1 }
  0xa8   : > { %v384_v57 = vadd.f32 %v383_v55, %v238_v41  ;;  %v396_v58 = vadd.f32 %v395_v56, %v258_v42  ;;  %v293_v59 = vpop.permute.xlu0 %292  ;;  %v298_v62 = vpop.permute.xlu1 %297 }
  0xa9   : > { %436 = vst [vmem:[%s922_s29 + $0x40] sm:$0xff] %v405_v54  ;;  %v417_v60 = vadd.f32 %v416_v53, %v293_v59 }
  0xaa   : > { %429 = vst [vmem:[%s922_s29 + $0x8] sm:$0xff] %v384_v57 }
  0xab   : > { %433 = vst [vmem:[%s922_s29 + $0x28] sm:$0xff] %v396_v58 }
  0xac   : > { %440 = vst [vmem:[%s922_s29 + $0x60] sm:$0xff] %v417_v60 }
  0xae   : > { %v407_v63 = vpop.f32.mrf.mxu2  ;;  %v419_v0 = vpop.f32.mrf.mxu3 }
  0xaf   : > { %v408_v1 = vadd.f32 %v407_v63, %v278_v49  ;;  %v420_v2 = vadd.f32 %v419_v0, %v298_v62  ;;  %v386_v3 = vpop.f32.mrf.mxu0  ;;  %v398_v4 = vpop.f32.mrf.mxu1 }
  0xb0   : > { %v387_v5 = vadd.f32 %v386_v3, %v243_v37  ;;  %v399_v6 = vadd.f32 %v398_v4, %v263_v43  ;;  %v308_v16 = vpop.permute.xlu0 %307 }
  0xb1   : > { %437 = vst [vmem:[%s922_s29 + $0x48] sm:$0xff] %v408_v1 }
  0xb2   : > { %441 = vst [vmem:[%s922_s29 + $0x68] sm:$0xff] %v420_v2 }
  0xb3   : > { %430 = vst [vmem:[%s922_s29 + $0x10] sm:$0xff] %v387_v5 }
  0xb4   : > { %434 = vst [vmem:[%s922_s29 + $0x30] sm:$0xff] %v399_v6 }
  0xb6   : > { %v410_v8 = vpop.f32.mrf.mxu2  ;;  %v422_v9 = vpop.f32.mrf.mxu3 }
  0xb7   : > { %v411_v10 = vadd.f32 %v410_v8, %v283_v51  ;;  %v423_v11 = vadd.f32 %v422_v9, %v303_v7  ;;  %v389_v12 = vpop.f32.mrf.mxu0  ;;  %v401_v13 = vpop.f32.mrf.mxu1 }
  0xb8   : > { %v390_v14 = vadd.f32 %v389_v12, %v248_v40  ;;  %v402_v15 = vadd.f32 %v401_v13, %v268_v44 }
  0xb9   : > { %438 = vst [vmem:[%s922_s29 + $0x50] sm:$0xff] %v411_v10 }
  0xba   : > { %442 = vst [vmem:[%s922_s29 + $0x70] sm:$0xff] %v423_v11 }
  0xbb   : > { %431 = vst [vmem:[%s922_s29 + $0x18] sm:$0xff] %v390_v14 }
  0xbc   : > { %435 = vst [vmem:[%s922_s29 + $0x38] sm:$0xff] %v402_v15 }
  0xbe   : > { %v413_v17 = vpop.f32.mrf.mxu2  ;;  %v425_v18 = vpop.f32.mrf.mxu3 }
  0xbf   : > { %v414_v19 = vadd.f32 %v413_v17, %v288_v61  ;;  %v426_v20 = vadd.f32 %v425_v18, %v308_v16 }
  0xc1   : > { %439 = vst [vmem:[%s922_s29 + $0x58] sm:$0xff] %v414_v19 }
  0xc2   : > { %443 = vst [vmem:[%s922_s29 + $0x78] sm:$0xff] %v426_v20 }
  0xc3   : > { %671 = shalt.err (!%p668_p5)
}
  0xc4   : > { %s725_s26 = smov 128   ;;  %s726_s27 = smov 8  }
  0xc5   : > { %583 = dma.vmem_to_hbm [thread:$0]  (%p787_p4), %s459_s7, 2048, %s461_s15, %s445_s8, %s725_s26, %s725_s26, %s726_s27  }
  0xc6 PF: > { %p589_p6 = scmp.ge.s32.totalorder %s722_s17, 2  ;;  %s475_s28 = sand.u32 1, %s702_s12  }
  0xc7   : > { %s476_s29 = scalar_lea.sflag [#allocation3], %s475_s28 }
  0xc8   : > { %p586_p7 = pnand %p589_p6, %p794_p8 }
  0xca   : > { %p587_p9 = pneg %p586_p7 }
  0xcc   : > { %697 = dma.done.wait (%p587_p9), %s476_s29, 2048  }
  0xcd   : > { %699 = vsyncadd (%p587_p9), %s476_s29, 4294965248  ;;  %s16_s17 = sadd.s32 1, %s722_s17   ;;  %s985_s12 = smov %s706_s13 }
  0xce   : > { %p13_p10 = scmp.ge.s32.totalorder %s16_s17, 4   ;;  %s986_s13 = smov %s710_s14 }
  0xcf   : > { %s987_s14 = smov %s800_s25  ;;  %s988_s15 = smov %s718_s16 }
  0xd0   : > { %s989_s16 = smov %s991_s20  ;;  %15 = sbr.rel (!%p13_p10) target bundleno = 4 (0x4), region = 67 }
  0xd5   :  { %482 = vsyncpa [#allocation3], 1 }
  0xd6   :  { %484 = vsyncpa [#allocation3 + $0x1], 1 }

</bundles_post_ra>
